<compile_context>
chip_gen: v7x
topology: tpu7x:2x2x1
jax: 0.10.0
libtpu: 0.0.40
codegen_flags: <defaults>
</compile_context>

<pallas_src>
import functools

import numpy as np
import jax
import jax.numpy as jnp
from jax import lax
from jax.experimental import pallas as pl
from jax.experimental.pallas import tpu as pltpu

# ---- "config" (small, forward-consistent shapes) ----
EMB_DIM = 32
SEQ_LEN = 16
BATCH = 4
NUM_CPC_INPUT_STEPS = 8
NUM_CPC_PREDICTIONS = 4

LANE = 128   # lane-tile width used to align segments inside the weight slab


def _out_layout(batch, num_preds):
    """Row layout of the single packed output slab."""
    row_ct = num_preds * batch                       # labels occupy [0, row_ct)
    row_pred = row_ct + ((batch + 7) // 8) * 8       # 8-aligned pred section
    n_rows = row_pred + num_preds * batch
    return row_ct, row_pred, n_rows


def cpc_kernel(start_ref, x_ref, h0_ref, w_ref, fb_ref, out_ref,
               *, num_steps, num_preds, lane):
    """GRU recurrence + fused Wk heads + label slicing, single invocation.

    start_ref : SMEM (1,) int32      input_start_timestep
    x_ref     : (S, B, H) f32        full sequence, time-major
    h0_ref    : (1, B, H) f32        initial hidden state (GRU layer 0)
    w_ref     : (H, 3*lane) bf16     packed weights: [W_ih^T | W_hh^T | Wk^T]
    fb_ref    : (3, lane) f32        packed biases : [gi_bias | b_hh_n | Wk_b]
    out_ref   : (n_rows, H) f32      packed outputs: labels / c_t / preds
    """
    T = num_steps
    P = num_preds
    S, B, H = x_ref.shape
    H2, H3 = 2 * H, 3 * H
    row_ct, row_pred, _ = _out_layout(B, P)

    start = start_ref[0]

    # ---- static, lane-tile-aligned carve-outs of the packed slabs (free) ----
    wih = w_ref[:, 0:H3]                         # (H, 3H)   bf16
    whh = w_ref[:, lane:lane + H3]               # (H, 3H)   bf16
    wk = w_ref[:, 2 * lane:2 * lane + P * H]     # (H, P*H)  bf16
    gi_bias = fb_ref[0:1, 0:H3]                  # (1, 3H)   f32  (b_ih + b_hh for r,z; b_ih_n)
    bhh_n = jnp.broadcast_to(fb_ref[1:2, 0:H], (B, H))   # hoisted broadcast
    wkb = fb_ref[2:3, 0:P * H]                   # (1, P*H)  f32

    # ---- encoded labels: the P timesteps right after the GRU window ----
    # Dynamic index on the untiled leading (time) dim only.
    for p in range(P):
        out_ref[p * B:(p + 1) * B, :] = x_ref[start + T + p]

    # ---- hoisted input-side matmuls + pre-sliced per-step gate inputs ----
    # All of this is independent of h, hence off the serial recurrence chain.
    gi_rz = []
    gi_n = []
    for t in range(T):
        x_t = x_ref[start + t]                                        # (B, H)
        gi_t = jnp.dot(x_t.astype(jnp.bfloat16), wih,
                       preferred_element_type=jnp.float32) + gi_bias  # (B, 3H)
        gi_rz.append(gi_t[:, 0:H2])
        gi_n.append(gi_t[:, H2:H3])

    # ---- GRU recurrence: statically unrolled, h carried in vregs ----
    h = h0_ref[0]                                                     # (B, H) f32
    for t in range(T):
        # one fused (B,H)x(H,3H) hidden matmul per step, bf16 single MXU pass
        gh = jnp.dot(h.astype(jnp.bfloat16), whh,
                     preferred_element_type=jnp.float32)              # (B, 3H)
        rz = jax.nn.sigmoid(gi_rz[t] + gh[:, 0:H2])    # r and z in ONE EUP pass
        r = rz[:, 0:H]
        z = rz[:, H:H2]
        n = jnp.tanh(gi_n[t] + r * (gh[:, H2:H3] + bhh_n))
        h = (1.0 - z) * n + z * h

    # ---- c_t and fused prediction heads (one (B,H)x(H,P*H) matmul) ----
    out_ref[row_ct:row_ct + B, :] = h
    pred = jnp.dot(h.astype(jnp.bfloat16), wk,
                   preferred_element_type=jnp.float32) + wkb          # (B, P*H)
    for p in range(P):   # store p-major so the wrapper only needs a reshape
        out_ref[row_pred + p * B:row_pred + (p + 1) * B, :] = \
            pred[:, p * H:(p + 1) * H]


def cpc_forward(x, hidden, kparams, input_start):
    """Mirrors CPCModule.forward: returns (encoded_labels, pred, c_t)."""
    B, S, H = x.shape
    P = NUM_CPC_PREDICTIONS
    T = NUM_CPC_INPUT_STEPS
    row_ct, row_pred, n_rows = _out_layout(B, P)

    # Time-major view so all in-kernel dynamic indexing hits the untiled
    # leading dim. (The old extra `.reshape(S*B, H)` glue is gone; this single
    # transpose is the remaining per-call prep.)
    x_tm = jnp.transpose(x, (1, 0, 2))                       # (S, B, H)
    start = jnp.asarray(input_start, jnp.int32).reshape((1,))

    kernel = functools.partial(cpc_kernel, num_steps=T, num_preds=P, lane=LANE)
    vmem = pltpu.MemorySpace.VMEM
    smem = pltpu.MemorySpace.SMEM

    out = pl.pallas_call(
        kernel,
        out_shape=jax.ShapeDtypeStruct((n_rows, H), jnp.float32),
        in_specs=[
            pl.BlockSpec(memory_space=smem),   # input_start (scalar)
            pl.BlockSpec(memory_space=vmem),   # x, time-major
            pl.BlockSpec(memory_space=vmem),   # hidden (1, B, H)
            pl.BlockSpec(memory_space=vmem),   # packed bf16 weight slab
            pl.BlockSpec(memory_space=vmem),   # packed f32 bias slab
        ],
        out_specs=pl.BlockSpec(memory_space=vmem),
    )(start, x_tm, hidden, kparams["w_slab"], kparams["fb_slab"])

    encoded_labels = out[0:P * B].reshape(P, B, H)            # bitcast reshape
    c_t = out[row_ct:row_ct + B]
    pred = out[row_pred:row_pred + P * B].reshape(P, B, H)    # bitcast reshape
    return encoded_labels, pred, c_t


def init_raw_params(key, H, P):
    """PyTorch-layout parameters matching the module's __init__.

    kaiming_normal(fan_out, relu) ~ N(0, 2/fan_out); GRU/Linear biases use
    PyTorch's default U(-1/sqrt(H), 1/sqrt(H)).
    """
    ks = jax.random.split(key, 6)
    std_gru = np.sqrt(2.0 / (3 * H))     # fan_out of (3H, H) weight
    std_lin = np.sqrt(2.0 / H)           # fan_out of (H, H) weight
    bbound = 1.0 / np.sqrt(H)
    return {
        "w_ih": jax.random.normal(ks[0], (3 * H, H), jnp.float32) * std_gru,
        "w_hh": jax.random.normal(ks[1], (3 * H, H), jnp.float32) * std_gru,
        "b_ih": jax.random.uniform(ks[2], (3 * H,), jnp.float32, -bbound, bbound),
        "b_hh": jax.random.uniform(ks[3], (3 * H,), jnp.float32, -bbound, bbound),
        "wk_w": jax.random.normal(ks[4], (P, H, H), jnp.float32) * std_lin,
        "wk_b": jax.random.uniform(ks[5], (P, H), jnp.float32, -bbound, bbound),
    }


def pack_params(raw):
    """PyTorch-layout params -> two packed kernel slabs (built once)."""
    H = EMB_DIM
    P = NUM_CPC_PREDICTIONS
    w_ih_t = raw["w_ih"].T                                    # (H, 3H)
    w_hh_t = raw["w_hh"].T                                    # (H, 3H)
    b_ih, b_hh = raw["b_ih"], raw["b_hh"]
    gi_bias = jnp.concatenate([
        b_ih[0:H] + b_hh[0:H],            # r-gate: b_ih_r + b_hh_r
        b_ih[H:2 * H] + b_hh[H:2 * H],    # z-gate: b_ih_z + b_hh_z
        b_ih[2 * H:3 * H],                # n-gate: b_ih_n only
    ])
    wk_all = jnp.concatenate([raw["wk_w"][i].T for i in range(P)], axis=1)
    wkb_all = raw["wk_b"].reshape(P * H)

    # bf16 weight slab, each segment starting on a 128-lane tile boundary.
    w_slab = jnp.zeros((H, 3 * LANE), jnp.bfloat16)
    w_slab = w_slab.at[:, 0:3 * H].set(w_ih_t.astype(jnp.bfloat16))
    w_slab = w_slab.at[:, LANE:LANE + 3 * H].set(w_hh_t.astype(jnp.bfloat16))
    w_slab = w_slab.at[:, 2 * LANE:2 * LANE + P * H].set(
        wk_all.astype(jnp.bfloat16))

    # f32 bias slab (biases stay full precision; added to f32 accumulators).
    fb_slab = jnp.zeros((3, LANE), jnp.float32)
    fb_slab = fb_slab.at[0, 0:3 * H].set(gi_bias)
    fb_slab = fb_slab.at[1, 0:H].set(b_hh[2 * H:3 * H])
    fb_slab = fb_slab.at[2, 0:P * H].set(wkb_all)

    return {"w_slab": w_slab, "fb_slab": fb_slab}


def reference_forward(x, hidden, raw, input_start):
    """Pure-JAX f32 reference of the PyTorch module's math."""
    B, S, H = x.shape
    T, P = NUM_CPC_INPUT_STEPS, NUM_CPC_PREDICTIONS
    out_start = input_start + T
    labels = jnp.transpose(
        lax.dynamic_slice(x, (0, out_start, 0), (B, P, H)), (1, 0, 2))
    seq = lax.dynamic_slice(x, (0, input_start, 0), (B, T, H))
    h = hidden[0]
    w_ih, w_hh, b_ih, b_hh = raw["w_ih"], raw["w_hh"], raw["b_ih"], raw["b_hh"]
    for t in range(T):
        x_t = seq[:, t, :]
        gi = x_t @ w_ih.T + b_ih
        gh = h @ w_hh.T + b_hh
        r = jax.nn.sigmoid(gi[:, :H] + gh[:, :H])
        z = jax.nn.sigmoid(gi[:, H:2 * H] + gh[:, H:2 * H])
        n = jnp.tanh(gi[:, 2 * H:] + r * gh[:, 2 * H:])
        h = (1.0 - z) * n + z * h
    pred = jnp.stack([h @ raw["wk_w"][i].T + raw["wk_b"][i] for i in range(P)],
                     axis=0)
    return labels, h, pred


if __name__ == "__main__":
    key = jax.random.PRNGKey(0)
    k_x, k_p, k_t = jax.random.split(key, 3)

    x = jax.random.normal(k_x, (BATCH, SEQ_LEN, EMB_DIM), jnp.float32)
    hidden = jnp.zeros((1, BATCH, EMB_DIM), jnp.float32)      # init_hidden
    raw = init_raw_params(k_p, EMB_DIM, NUM_CPC_PREDICTIONS)
    kparams = pack_params(raw)

    # torch.randint(seq - (T + P)) equivalent, drawn deterministically here.
    # TODO(synk): the random start draw lives host-side, not in-kernel.
    max_start = SEQ_LEN - (NUM_CPC_INPUT_STEPS + NUM_CPC_PREDICTIONS)
    input_start = int(jax.random.randint(k_t, (), 0, max_start))

    fwd = jax.jit(cpc_forward)
    encoded_labels, pred, c_t = fwd(x, hidden, kparams, jnp.int32(input_start))
    jax.block_until_ready((encoded_labels, pred, c_t))

    # sanity check against a pure-JAX f32 reference (kernel uses bf16 MXU
    # operands with f32 accumulation -> relaxed tolerance for GRU/pred).
    labels_ref, c_ref, pred_ref = reference_forward(x, hidden, raw, input_start)
    assert encoded_labels.shape == (NUM_CPC_PREDICTIONS, BATCH, EMB_DIM)
    assert pred.shape == (NUM_CPC_PREDICTIONS, BATCH, EMB_DIM)
    assert c_t.shape == (BATCH, EMB_DIM)
    np.testing.assert_allclose(np.asarray(encoded_labels), np.asarray(labels_ref),
                               rtol=1e-6, atol=1e-6)
    np.testing.assert_allclose(np.asarray(c_t), np.asarray(c_ref),
                               rtol=2e-2, atol=2e-2)
    np.testing.assert_allclose(np.asarray(pred), np.asarray(pred_ref),
                               rtol=2e-2, atol=2e-2)

    print("KERNEL_OK")
</pallas_src>

<mosaic_0001>
module attributes {stable_mosaic.version = 11 : i64} {
  func.func @cpc_kernel(%arg0: memref<1xi32, #tpu.memory_space<smem>>, %arg1: memref<16x4x32xf32, #tpu.memory_space<vmem>>, %arg2: memref<1x4x32xf32, #tpu.memory_space<vmem>>, %arg3: memref<32x384xbf16, #tpu.memory_space<vmem>>, %arg4: memref<3x128xf32, #tpu.memory_space<vmem>>, %arg5: memref<40x32xf32, #tpu.memory_space<vmem>>) attributes {dimension_semantics = [], scalar_prefetch = 0 : i64, scratch_operands = 0 : i64, tpu.core_type = #tpu.core_type<tc>} {
    %c0 = arith.constant 0 : index
    %0 = memref.load %arg0[%c0] : memref<1xi32, #tpu.memory_space<smem>>
    %c0_0 = arith.constant 0 : index
    %c0_1 = arith.constant 0 : index
    %1 = vector.load %arg3[%c0_0, %c0_1] : memref<32x384xbf16, #tpu.memory_space<vmem>>, vector<32x96xbf16>
    %c0_2 = arith.constant 0 : index
    %c128 = arith.constant 128 : index
    %2 = vector.load %arg3[%c0_2, %c128] : memref<32x384xbf16, #tpu.memory_space<vmem>>, vector<32x96xbf16>
    %c0_3 = arith.constant 0 : index
    %c256 = arith.constant 256 : index
    %3 = vector.load %arg3[%c0_3, %c256] : memref<32x384xbf16, #tpu.memory_space<vmem>>, vector<32x128xbf16>
    %c0_4 = arith.constant 0 : index
    %c0_5 = arith.constant 0 : index
    %4 = vector.load %arg4[%c0_4, %c0_5] : memref<3x128xf32, #tpu.memory_space<vmem>>, vector<1x96xf32>
    %c1 = arith.constant 1 : index
    %c0_6 = arith.constant 0 : index
    %5 = vector.load %arg4[%c1, %c0_6] : memref<3x128xf32, #tpu.memory_space<vmem>>, vector<1x32xf32>
    %6 = vector.shape_cast %5 : vector<1x32xf32> to vector<1x32xf32>
    %7 = vector.broadcast %6 : vector<1x32xf32> to vector<4x32xf32>
    %c2 = arith.constant 2 : index
    %c0_7 = arith.constant 0 : index
    %8 = vector.load %arg4[%c2, %c0_7] : memref<3x128xf32, #tpu.memory_space<vmem>>, vector<1x128xf32>
    %c8_i32 = arith.constant 8 : i32
    %9 = arith.addi %0, %c8_i32 : i32
    %c0_i32 = arith.constant 0 : i32
    %10 = arith.addi %9, %c0_i32 : i32
    %11 = arith.index_cast %10 : i32 to index
    %c0_8 = arith.constant 0 : index
    %c0_9 = arith.constant 0 : index
    %12 = vector.load %arg1[%11, %c0_8, %c0_9] : memref<16x4x32xf32, #tpu.memory_space<vmem>>, vector<1x4x32xf32>
    %13 = vector.shape_cast %12 : vector<1x4x32xf32> to vector<4x32xf32>
    %c0_10 = arith.constant 0 : index
    %c0_11 = arith.constant 0 : index
    %14 = vector.load %arg5[%c0_10, %c0_11] : memref<40x32xf32, #tpu.memory_space<vmem>>, vector<4x32xf32>
    tpu.vector_store %arg5[%c0_10, %c0_11], %13 {strides = array<i32>} : memref<40x32xf32, #tpu.memory_space<vmem>>, vector<4x32xf32>,
    %c8_i32_12 = arith.constant 8 : i32
    %15 = arith.addi %0, %c8_i32_12 : i32
    %c1_i32 = arith.constant 1 : i32
    %16 = arith.addi %15, %c1_i32 : i32
    %17 = arith.index_cast %16 : i32 to index
    %c0_13 = arith.constant 0 : index
    %c0_14 = arith.constant 0 : index
    %18 = vector.load %arg1[%17, %c0_13, %c0_14] : memref<16x4x32xf32, #tpu.memory_space<vmem>>, vector<1x4x32xf32>
    %19 = vector.shape_cast %18 : vector<1x4x32xf32> to vector<4x32xf32>
    %c4 = arith.constant 4 : index
    %c0_15 = arith.constant 0 : index
    %20 = vector.load %arg5[%c4, %c0_15] : memref<40x32xf32, #tpu.memory_space<vmem>>, vector<4x32xf32>
    tpu.vector_store %arg5[%c4, %c0_15], %19 {strides = array<i32>} : memref<40x32xf32, #tpu.memory_space<vmem>>, vector<4x32xf32>,
    %c8_i32_16 = arith.constant 8 : i32
    %21 = arith.addi %0, %c8_i32_16 : i32
    %c2_i32 = arith.constant 2 : i32
    %22 = arith.addi %21, %c2_i32 : i32
    %23 = arith.index_cast %22 : i32 to index
    %c0_17 = arith.constant 0 : index
    %c0_18 = arith.constant 0 : index
    %24 = vector.load %arg1[%23, %c0_17, %c0_18] : memref<16x4x32xf32, #tpu.memory_space<vmem>>, vector<1x4x32xf32>
    %25 = vector.shape_cast %24 : vector<1x4x32xf32> to vector<4x32xf32>
    %c8 = arith.constant 8 : index
    %c0_19 = arith.constant 0 : index
    %26 = vector.load %arg5[%c8, %c0_19] : memref<40x32xf32, #tpu.memory_space<vmem>>, vector<4x32xf32>
    tpu.vector_store %arg5[%c8, %c0_19], %25 {strides = array<i32>} : memref<40x32xf32, #tpu.memory_space<vmem>>, vector<4x32xf32>,
    %c8_i32_20 = arith.constant 8 : i32
    %27 = arith.addi %0, %c8_i32_20 : i32
    %c3_i32 = arith.constant 3 : i32
    %28 = arith.addi %27, %c3_i32 : i32
    %29 = arith.index_cast %28 : i32 to index
    %c0_21 = arith.constant 0 : index
    %c0_22 = arith.constant 0 : index
    %30 = vector.load %arg1[%29, %c0_21, %c0_22] : memref<16x4x32xf32, #tpu.memory_space<vmem>>, vector<1x4x32xf32>
    %31 = vector.shape_cast %30 : vector<1x4x32xf32> to vector<4x32xf32>
    %c12 = arith.constant 12 : index
    %c0_23 = arith.constant 0 : index
    %32 = vector.load %arg5[%c12, %c0_23] : memref<40x32xf32, #tpu.memory_space<vmem>>, vector<4x32xf32>
    tpu.vector_store %arg5[%c12, %c0_23], %31 {strides = array<i32>} : memref<40x32xf32, #tpu.memory_space<vmem>>, vector<4x32xf32>,
    %c0_i32_24 = arith.constant 0 : i32
    %33 = arith.addi %0, %c0_i32_24 : i32
    %34 = arith.index_cast %33 : i32 to index
    %c0_25 = arith.constant 0 : index
    %c0_26 = arith.constant 0 : index
    %35 = vector.load %arg1[%34, %c0_25, %c0_26] : memref<16x4x32xf32, #tpu.memory_space<vmem>>, vector<1x4x32xf32>
    %36 = vector.shape_cast %35 : vector<1x4x32xf32> to vector<4x32xf32>
    %37 = arith.truncf %36 : vector<4x32xf32> to vector<4x32xbf16>
    %cst = arith.constant dense<0.000000e+00> : vector<4x96xf32>
    %38 = tpu.matmul %37, %1, %cst {dimension_numbers = #tpu.dot_dimension_numbers<[1], [0], [0], [1], [0, 0, 1, 1], [], []>} : vector<4x32xbf16>, vector<32x96xbf16>, vector<4x96xf32> -> vector<4x96xf32>
    %39 = vector.broadcast %4 : vector<1x96xf32> to vector<4x96xf32>
    %40 = arith.addf %38, %39 : vector<4x96xf32>
    %41 = vector.extract_strided_slice %40 {offsets = [0, 0], sizes = [4, 64], strides = [1, 1]} : vector<4x96xf32> to vector<4x64xf32>
    %42 = vector.extract_strided_slice %40 {offsets = [0, 64], sizes = [4, 32], strides = [1, 1]} : vector<4x96xf32> to vector<4x32xf32>
    %c1_i32_27 = arith.constant 1 : i32
    %43 = arith.addi %0, %c1_i32_27 : i32
    %44 = arith.index_cast %43 : i32 to index
    %c0_28 = arith.constant 0 : index
    %c0_29 = arith.constant 0 : index
    %45 = vector.load %arg1[%44, %c0_28, %c0_29] : memref<16x4x32xf32, #tpu.memory_space<vmem>>, vector<1x4x32xf32>
    %46 = vector.shape_cast %45 : vector<1x4x32xf32> to vector<4x32xf32>
    %47 = arith.truncf %46 : vector<4x32xf32> to vector<4x32xbf16>
    %cst_30 = arith.constant dense<0.000000e+00> : vector<4x96xf32>
    %48 = tpu.matmul %47, %1, %cst_30 {dimension_numbers = #tpu.dot_dimension_numbers<[1], [0], [0], [1], [0, 0, 1, 1], [], []>} : vector<4x32xbf16>, vector<32x96xbf16>, vector<4x96xf32> -> vector<4x96xf32>
    %49 = vector.broadcast %4 : vector<1x96xf32> to vector<4x96xf32>
    %50 = arith.addf %48, %49 : vector<4x96xf32>
    %51 = vector.extract_strided_slice %50 {offsets = [0, 0], sizes = [4, 64], strides = [1, 1]} : vector<4x96xf32> to vector<4x64xf32>
    %52 = vector.extract_strided_slice %50 {offsets = [0, 64], sizes = [4, 32], strides = [1, 1]} : vector<4x96xf32> to vector<4x32xf32>
    %c2_i32_31 = arith.constant 2 : i32
    %53 = arith.addi %0, %c2_i32_31 : i32
    %54 = arith.index_cast %53 : i32 to index
    %c0_32 = arith.constant 0 : index
    %c0_33 = arith.constant 0 : index
    %55 = vector.load %arg1[%54, %c0_32, %c0_33] : memref<16x4x32xf32, #tpu.memory_space<vmem>>, vector<1x4x32xf32>
    %56 = vector.shape_cast %55 : vector<1x4x32xf32> to vector<4x32xf32>
    %57 = arith.truncf %56 : vector<4x32xf32> to vector<4x32xbf16>
    %cst_34 = arith.constant dense<0.000000e+00> : vector<4x96xf32>
    %58 = tpu.matmul %57, %1, %cst_34 {dimension_numbers = #tpu.dot_dimension_numbers<[1], [0], [0], [1], [0, 0, 1, 1], [], []>} : vector<4x32xbf16>, vector<32x96xbf16>, vector<4x96xf32> -> vector<4x96xf32>
    %59 = vector.broadcast %4 : vector<1x96xf32> to vector<4x96xf32>
    %60 = arith.addf %58, %59 : vector<4x96xf32>
    %61 = vector.extract_strided_slice %60 {offsets = [0, 0], sizes = [4, 64], strides = [1, 1]} : vector<4x96xf32> to vector<4x64xf32>
    %62 = vector.extract_strided_slice %60 {offsets = [0, 64], sizes = [4, 32], strides = [1, 1]} : vector<4x96xf32> to vector<4x32xf32>
    %c3_i32_35 = arith.constant 3 : i32
    %63 = arith.addi %0, %c3_i32_35 : i32
    %64 = arith.index_cast %63 : i32 to index
    %c0_36 = arith.constant 0 : index
    %c0_37 = arith.constant 0 : index
    %65 = vector.load %arg1[%64, %c0_36, %c0_37] : memref<16x4x32xf32, #tpu.memory_space<vmem>>, vector<1x4x32xf32>
    %66 = vector.shape_cast %65 : vector<1x4x32xf32> to vector<4x32xf32>
    %67 = arith.truncf %66 : vector<4x32xf32> to vector<4x32xbf16>
    %cst_38 = arith.constant dense<0.000000e+00> : vector<4x96xf32>
    %68 = tpu.matmul %67, %1, %cst_38 {dimension_numbers = #tpu.dot_dimension_numbers<[1], [0], [0], [1], [0, 0, 1, 1], [], []>} : vector<4x32xbf16>, vector<32x96xbf16>, vector<4x96xf32> -> vector<4x96xf32>
    %69 = vector.broadcast %4 : vector<1x96xf32> to vector<4x96xf32>
    %70 = arith.addf %68, %69 : vector<4x96xf32>
    %71 = vector.extract_strided_slice %70 {offsets = [0, 0], sizes = [4, 64], strides = [1, 1]} : vector<4x96xf32> to vector<4x64xf32>
    %72 = vector.extract_strided_slice %70 {offsets = [0, 64], sizes = [4, 32], strides = [1, 1]} : vector<4x96xf32> to vector<4x32xf32>
    %c4_i32 = arith.constant 4 : i32
    %73 = arith.addi %0, %c4_i32 : i32
    %74 = arith.index_cast %73 : i32 to index
    %c0_39 = arith.constant 0 : index
    %c0_40 = arith.constant 0 : index
    %75 = vector.load %arg1[%74, %c0_39, %c0_40] : memref<16x4x32xf32, #tpu.memory_space<vmem>>, vector<1x4x32xf32>
    %76 = vector.shape_cast %75 : vector<1x4x32xf32> to vector<4x32xf32>
    %77 = arith.truncf %76 : vector<4x32xf32> to vector<4x32xbf16>
    %cst_41 = arith.constant dense<0.000000e+00> : vector<4x96xf32>
    %78 = tpu.matmul %77, %1, %cst_41 {dimension_numbers = #tpu.dot_dimension_numbers<[1], [0], [0], [1], [0, 0, 1, 1], [], []>} : vector<4x32xbf16>, vector<32x96xbf16>, vector<4x96xf32> -> vector<4x96xf32>
    %79 = vector.broadcast %4 : vector<1x96xf32> to vector<4x96xf32>
    %80 = arith.addf %78, %79 : vector<4x96xf32>
    %81 = vector.extract_strided_slice %80 {offsets = [0, 0], sizes = [4, 64], strides = [1, 1]} : vector<4x96xf32> to vector<4x64xf32>
    %82 = vector.extract_strided_slice %80 {offsets = [0, 64], sizes = [4, 32], strides = [1, 1]} : vector<4x96xf32> to vector<4x32xf32>
    %c5_i32 = arith.constant 5 : i32
    %83 = arith.addi %0, %c5_i32 : i32
    %84 = arith.index_cast %83 : i32 to index
    %c0_42 = arith.constant 0 : index
    %c0_43 = arith.constant 0 : index
    %85 = vector.load %arg1[%84, %c0_42, %c0_43] : memref<16x4x32xf32, #tpu.memory_space<vmem>>, vector<1x4x32xf32>
    %86 = vector.shape_cast %85 : vector<1x4x32xf32> to vector<4x32xf32>
    %87 = arith.truncf %86 : vector<4x32xf32> to vector<4x32xbf16>
    %cst_44 = arith.constant dense<0.000000e+00> : vector<4x96xf32>
    %88 = tpu.matmul %87, %1, %cst_44 {dimension_numbers = #tpu.dot_dimension_numbers<[1], [0], [0], [1], [0, 0, 1, 1], [], []>} : vector<4x32xbf16>, vector<32x96xbf16>, vector<4x96xf32> -> vector<4x96xf32>
    %89 = vector.broadcast %4 : vector<1x96xf32> to vector<4x96xf32>
    %90 = arith.addf %88, %89 : vector<4x96xf32>
    %91 = vector.extract_strided_slice %90 {offsets = [0, 0], sizes = [4, 64], strides = [1, 1]} : vector<4x96xf32> to vector<4x64xf32>
    %92 = vector.extract_strided_slice %90 {offsets = [0, 64], sizes = [4, 32], strides = [1, 1]} : vector<4x96xf32> to vector<4x32xf32>
    %c6_i32 = arith.constant 6 : i32
    %93 = arith.addi %0, %c6_i32 : i32
    %94 = arith.index_cast %93 : i32 to index
    %c0_45 = arith.constant 0 : index
    %c0_46 = arith.constant 0 : index
    %95 = vector.load %arg1[%94, %c0_45, %c0_46] : memref<16x4x32xf32, #tpu.memory_space<vmem>>, vector<1x4x32xf32>
    %96 = vector.shape_cast %95 : vector<1x4x32xf32> to vector<4x32xf32>
    %97 = arith.truncf %96 : vector<4x32xf32> to vector<4x32xbf16>
    %cst_47 = arith.constant dense<0.000000e+00> : vector<4x96xf32>
    %98 = tpu.matmul %97, %1, %cst_47 {dimension_numbers = #tpu.dot_dimension_numbers<[1], [0], [0], [1], [0, 0, 1, 1], [], []>} : vector<4x32xbf16>, vector<32x96xbf16>, vector<4x96xf32> -> vector<4x96xf32>
    %99 = vector.broadcast %4 : vector<1x96xf32> to vector<4x96xf32>
    %100 = arith.addf %98, %99 : vector<4x96xf32>
    %101 = vector.extract_strided_slice %100 {offsets = [0, 0], sizes = [4, 64], strides = [1, 1]} : vector<4x96xf32> to vector<4x64xf32>
    %102 = vector.extract_strided_slice %100 {offsets = [0, 64], sizes = [4, 32], strides = [1, 1]} : vector<4x96xf32> to vector<4x32xf32>
    %c7_i32 = arith.constant 7 : i32
    %103 = arith.addi %0, %c7_i32 : i32
    %104 = arith.index_cast %103 : i32 to index
    %c0_48 = arith.constant 0 : index
    %c0_49 = arith.constant 0 : index
    %105 = vector.load %arg1[%104, %c0_48, %c0_49] : memref<16x4x32xf32, #tpu.memory_space<vmem>>, vector<1x4x32xf32>
    %106 = vector.shape_cast %105 : vector<1x4x32xf32> to vector<4x32xf32>
    %107 = arith.truncf %106 : vector<4x32xf32> to vector<4x32xbf16>
    %cst_50 = arith.constant dense<0.000000e+00> : vector<4x96xf32>
    %108 = tpu.matmul %107, %1, %cst_50 {dimension_numbers = #tpu.dot_dimension_numbers<[1], [0], [0], [1], [0, 0, 1, 1], [], []>} : vector<4x32xbf16>, vector<32x96xbf16>, vector<4x96xf32> -> vector<4x96xf32>
    %109 = vector.broadcast %4 : vector<1x96xf32> to vector<4x96xf32>
    %110 = arith.addf %108, %109 : vector<4x96xf32>
    %111 = vector.extract_strided_slice %110 {offsets = [0, 0], sizes = [4, 64], strides = [1, 1]} : vector<4x96xf32> to vector<4x64xf32>
    %112 = vector.extract_strided_slice %110 {offsets = [0, 64], sizes = [4, 32], strides = [1, 1]} : vector<4x96xf32> to vector<4x32xf32>
    %c0_51 = arith.constant 0 : index
    %c0_52 = arith.constant 0 : index
    %c0_53 = arith.constant 0 : index
    %113 = vector.load %arg2[%c0_51, %c0_52, %c0_53] : memref<1x4x32xf32, #tpu.memory_space<vmem>>, vector<1x4x32xf32>
    %114 = vector.shape_cast %113 : vector<1x4x32xf32> to vector<4x32xf32>
    %115 = arith.truncf %114 : vector<4x32xf32> to vector<4x32xbf16>
    %cst_54 = arith.constant dense<0.000000e+00> : vector<4x96xf32>
    %116 = tpu.matmul %115, %2, %cst_54 {dimension_numbers = #tpu.dot_dimension_numbers<[1], [0], [0], [1], [0, 0, 1, 1], [], []>} : vector<4x32xbf16>, vector<32x96xbf16>, vector<4x96xf32> -> vector<4x96xf32>
    %117 = vector.extract_strided_slice %116 {offsets = [0, 0], sizes = [4, 64], strides = [1, 1]} : vector<4x96xf32> to vector<4x64xf32>
    %118 = arith.addf %41, %117 : vector<4x64xf32>
    %119 = arith.negf %118 : vector<4x64xf32>
    %120 = math.exp %119 : vector<4x64xf32>
    %cst_55 = arith.constant 1.000000e+00 : f32
    %121 = vector.broadcast %cst_55 : f32 to vector<4x64xf32>
    %122 = arith.addf %121, %120 : vector<4x64xf32>
    %123 = arith.divf %121, %122 : vector<4x64xf32>
    %124 = vector.extract_strided_slice %123 {offsets = [0, 0], sizes = [4, 32], strides = [1, 1]} : vector<4x64xf32> to vector<4x32xf32>
    %125 = vector.extract_strided_slice %123 {offsets = [0, 32], sizes = [4, 32], strides = [1, 1]} : vector<4x64xf32> to vector<4x32xf32>
    %126 = vector.extract_strided_slice %116 {offsets = [0, 64], sizes = [4, 32], strides = [1, 1]} : vector<4x96xf32> to vector<4x32xf32>
    %127 = arith.addf %126, %7 : vector<4x32xf32>
    %128 = arith.mulf %124, %127 : vector<4x32xf32>
    %129 = arith.addf %42, %128 : vector<4x32xf32>
    %130 = math.tanh %129 : vector<4x32xf32>
    %cst_56 = arith.constant 1.000000e+00 : f32
    %131 = vector.broadcast %cst_56 : f32 to vector<4x32xf32>
    %132 = arith.subf %131, %125 : vector<4x32xf32>
    %133 = arith.mulf %132, %130 : vector<4x32xf32>
    %134 = arith.mulf %125, %114 : vector<4x32xf32>
    %135 = arith.addf %133, %134 : vector<4x32xf32>
    %136 = arith.truncf %135 : vector<4x32xf32> to vector<4x32xbf16>
    %cst_57 = arith.constant dense<0.000000e+00> : vector<4x96xf32>
    %137 = tpu.matmul %136, %2, %cst_57 {dimension_numbers = #tpu.dot_dimension_numbers<[1], [0], [0], [1], [0, 0, 1, 1], [], []>} : vector<4x32xbf16>, vector<32x96xbf16>, vector<4x96xf32> -> vector<4x96xf32>
    %138 = vector.extract_strided_slice %137 {offsets = [0, 0], sizes = [4, 64], strides = [1, 1]} : vector<4x96xf32> to vector<4x64xf32>
    %139 = arith.addf %51, %138 : vector<4x64xf32>
    %140 = arith.negf %139 : vector<4x64xf32>
    %141 = math.exp %140 : vector<4x64xf32>
    %cst_58 = arith.constant 1.000000e+00 : f32
    %142 = vector.broadcast %cst_58 : f32 to vector<4x64xf32>
    %143 = arith.addf %142, %141 : vector<4x64xf32>
    %144 = arith.divf %142, %143 : vector<4x64xf32>
    %145 = vector.extract_strided_slice %144 {offsets = [0, 0], sizes = [4, 32], strides = [1, 1]} : vector<4x64xf32> to vector<4x32xf32>
    %146 = vector.extract_strided_slice %144 {offsets = [0, 32], sizes = [4, 32], strides = [1, 1]} : vector<4x64xf32> to vector<4x32xf32>
    %147 = vector.extract_strided_slice %137 {offsets = [0, 64], sizes = [4, 32], strides = [1, 1]} : vector<4x96xf32> to vector<4x32xf32>
    %148 = arith.addf %147, %7 : vector<4x32xf32>
    %149 = arith.mulf %145, %148 : vector<4x32xf32>
    %150 = arith.addf %52, %149 : vector<4x32xf32>
    %151 = math.tanh %150 : vector<4x32xf32>
    %cst_59 = arith.constant 1.000000e+00 : f32
    %152 = vector.broadcast %cst_59 : f32 to vector<4x32xf32>
    %153 = arith.subf %152, %146 : vector<4x32xf32>
    %154 = arith.mulf %153, %151 : vector<4x32xf32>
    %155 = arith.mulf %146, %135 : vector<4x32xf32>
    %156 = arith.addf %154, %155 : vector<4x32xf32>
    %157 = arith.truncf %156 : vector<4x32xf32> to vector<4x32xbf16>
    %cst_60 = arith.constant dense<0.000000e+00> : vector<4x96xf32>
    %158 = tpu.matmul %157, %2, %cst_60 {dimension_numbers = #tpu.dot_dimension_numbers<[1], [0], [0], [1], [0, 0, 1, 1], [], []>} : vector<4x32xbf16>, vector<32x96xbf16>, vector<4x96xf32> -> vector<4x96xf32>
    %159 = vector.extract_strided_slice %158 {offsets = [0, 0], sizes = [4, 64], strides = [1, 1]} : vector<4x96xf32> to vector<4x64xf32>
    %160 = arith.addf %61, %159 : vector<4x64xf32>
    %161 = arith.negf %160 : vector<4x64xf32>
    %162 = math.exp %161 : vector<4x64xf32>
    %cst_61 = arith.constant 1.000000e+00 : f32
    %163 = vector.broadcast %cst_61 : f32 to vector<4x64xf32>
    %164 = arith.addf %163, %162 : vector<4x64xf32>
    %165 = arith.divf %163, %164 : vector<4x64xf32>
    %166 = vector.extract_strided_slice %165 {offsets = [0, 0], sizes = [4, 32], strides = [1, 1]} : vector<4x64xf32> to vector<4x32xf32>
    %167 = vector.extract_strided_slice %165 {offsets = [0, 32], sizes = [4, 32], strides = [1, 1]} : vector<4x64xf32> to vector<4x32xf32>
    %168 = vector.extract_strided_slice %158 {offsets = [0, 64], sizes = [4, 32], strides = [1, 1]} : vector<4x96xf32> to vector<4x32xf32>
    %169 = arith.addf %168, %7 : vector<4x32xf32>
    %170 = arith.mulf %166, %169 : vector<4x32xf32>
    %171 = arith.addf %62, %170 : vector<4x32xf32>
    %172 = math.tanh %171 : vector<4x32xf32>
    %cst_62 = arith.constant 1.000000e+00 : f32
    %173 = vector.broadcast %cst_62 : f32 to vector<4x32xf32>
    %174 = arith.subf %173, %167 : vector<4x32xf32>
    %175 = arith.mulf %174, %172 : vector<4x32xf32>
    %176 = arith.mulf %167, %156 : vector<4x32xf32>
    %177 = arith.addf %175, %176 : vector<4x32xf32>
    %178 = arith.truncf %177 : vector<4x32xf32> to vector<4x32xbf16>
    %cst_63 = arith.constant dense<0.000000e+00> : vector<4x96xf32>
    %179 = tpu.matmul %178, %2, %cst_63 {dimension_numbers = #tpu.dot_dimension_numbers<[1], [0], [0], [1], [0, 0, 1, 1], [], []>} : vector<4x32xbf16>, vector<32x96xbf16>, vector<4x96xf32> -> vector<4x96xf32>
    %180 = vector.extract_strided_slice %179 {offsets = [0, 0], sizes = [4, 64], strides = [1, 1]} : vector<4x96xf32> to vector<4x64xf32>
    %181 = arith.addf %71, %180 : vector<4x64xf32>
    %182 = arith.negf %181 : vector<4x64xf32>
    %183 = math.exp %182 : vector<4x64xf32>
    %cst_64 = arith.constant 1.000000e+00 : f32
    %184 = vector.broadcast %cst_64 : f32 to vector<4x64xf32>
    %185 = arith.addf %184, %183 : vector<4x64xf32>
    %186 = arith.divf %184, %185 : vector<4x64xf32>
    %187 = vector.extract_strided_slice %186 {offsets = [0, 0], sizes = [4, 32], strides = [1, 1]} : vector<4x64xf32> to vector<4x32xf32>
    %188 = vector.extract_strided_slice %186 {offsets = [0, 32], sizes = [4, 32], strides = [1, 1]} : vector<4x64xf32> to vector<4x32xf32>
    %189 = vector.extract_strided_slice %179 {offsets = [0, 64], sizes = [4, 32], strides = [1, 1]} : vector<4x96xf32> to vector<4x32xf32>
    %190 = arith.addf %189, %7 : vector<4x32xf32>
    %191 = arith.mulf %187, %190 : vector<4x32xf32>
    %192 = arith.addf %72, %191 : vector<4x32xf32>
    %193 = math.tanh %192 : vector<4x32xf32>
    %cst_65 = arith.constant 1.000000e+00 : f32
    %194 = vector.broadcast %cst_65 : f32 to vector<4x32xf32>
    %195 = arith.subf %194, %188 : vector<4x32xf32>
    %196 = arith.mulf %195, %193 : vector<4x32xf32>
    %197 = arith.mulf %188, %177 : vector<4x32xf32>
    %198 = arith.addf %196, %197 : vector<4x32xf32>
    %199 = arith.truncf %198 : vector<4x32xf32> to vector<4x32xbf16>
    %cst_66 = arith.constant dense<0.000000e+00> : vector<4x96xf32>
    %200 = tpu.matmul %199, %2, %cst_66 {dimension_numbers = #tpu.dot_dimension_numbers<[1], [0], [0], [1], [0, 0, 1, 1], [], []>} : vector<4x32xbf16>, vector<32x96xbf16>, vector<4x96xf32> -> vector<4x96xf32>
    %201 = vector.extract_strided_slice %200 {offsets = [0, 0], sizes = [4, 64], strides = [1, 1]} : vector<4x96xf32> to vector<4x64xf32>
    %202 = arith.addf %81, %201 : vector<4x64xf32>
    %203 = arith.negf %202 : vector<4x64xf32>
    %204 = math.exp %203 : vector<4x64xf32>
    %cst_67 = arith.constant 1.000000e+00 : f32
    %205 = vector.broadcast %cst_67 : f32 to vector<4x64xf32>
    %206 = arith.addf %205, %204 : vector<4x64xf32>
    %207 = arith.divf %205, %206 : vector<4x64xf32>
    %208 = vector.extract_strided_slice %207 {offsets = [0, 0], sizes = [4, 32], strides = [1, 1]} : vector<4x64xf32> to vector<4x32xf32>
    %209 = vector.extract_strided_slice %207 {offsets = [0, 32], sizes = [4, 32], strides = [1, 1]} : vector<4x64xf32> to vector<4x32xf32>
    %210 = vector.extract_strided_slice %200 {offsets = [0, 64], sizes = [4, 32], strides = [1, 1]} : vector<4x96xf32> to vector<4x32xf32>
    %211 = arith.addf %210, %7 : vector<4x32xf32>
    %212 = arith.mulf %208, %211 : vector<4x32xf32>
    %213 = arith.addf %82, %212 : vector<4x32xf32>
    %214 = math.tanh %213 : vector<4x32xf32>
    %cst_68 = arith.constant 1.000000e+00 : f32
    %215 = vector.broadcast %cst_68 : f32 to vector<4x32xf32>
    %216 = arith.subf %215, %209 : vector<4x32xf32>
    %217 = arith.mulf %216, %214 : vector<4x32xf32>
    %218 = arith.mulf %209, %198 : vector<4x32xf32>
    %219 = arith.addf %217, %218 : vector<4x32xf32>
    %220 = arith.truncf %219 : vector<4x32xf32> to vector<4x32xbf16>
    %cst_69 = arith.constant dense<0.000000e+00> : vector<4x96xf32>
    %221 = tpu.matmul %220, %2, %cst_69 {dimension_numbers = #tpu.dot_dimension_numbers<[1], [0], [0], [1], [0, 0, 1, 1], [], []>} : vector<4x32xbf16>, vector<32x96xbf16>, vector<4x96xf32> -> vector<4x96xf32>
    %222 = vector.extract_strided_slice %221 {offsets = [0, 0], sizes = [4, 64], strides = [1, 1]} : vector<4x96xf32> to vector<4x64xf32>
    %223 = arith.addf %91, %222 : vector<4x64xf32>
    %224 = arith.negf %223 : vector<4x64xf32>
    %225 = math.exp %224 : vector<4x64xf32>
    %cst_70 = arith.constant 1.000000e+00 : f32
    %226 = vector.broadcast %cst_70 : f32 to vector<4x64xf32>
    %227 = arith.addf %226, %225 : vector<4x64xf32>
    %228 = arith.divf %226, %227 : vector<4x64xf32>
    %229 = vector.extract_strided_slice %228 {offsets = [0, 0], sizes = [4, 32], strides = [1, 1]} : vector<4x64xf32> to vector<4x32xf32>
    %230 = vector.extract_strided_slice %228 {offsets = [0, 32], sizes = [4, 32], strides = [1, 1]} : vector<4x64xf32> to vector<4x32xf32>
    %231 = vector.extract_strided_slice %221 {offsets = [0, 64], sizes = [4, 32], strides = [1, 1]} : vector<4x96xf32> to vector<4x32xf32>
    %232 = arith.addf %231, %7 : vector<4x32xf32>
    %233 = arith.mulf %229, %232 : vector<4x32xf32>
    %234 = arith.addf %92, %233 : vector<4x32xf32>
    %235 = math.tanh %234 : vector<4x32xf32>
    %cst_71 = arith.constant 1.000000e+00 : f32
    %236 = vector.broadcast %cst_71 : f32 to vector<4x32xf32>
    %237 = arith.subf %236, %230 : vector<4x32xf32>
    %238 = arith.mulf %237, %235 : vector<4x32xf32>
    %239 = arith.mulf %230, %219 : vector<4x32xf32>
    %240 = arith.addf %238, %239 : vector<4x32xf32>
    %241 = arith.truncf %240 : vector<4x32xf32> to vector<4x32xbf16>
    %cst_72 = arith.constant dense<0.000000e+00> : vector<4x96xf32>
    %242 = tpu.matmul %241, %2, %cst_72 {dimension_numbers = #tpu.dot_dimension_numbers<[1], [0], [0], [1], [0, 0, 1, 1], [], []>} : vector<4x32xbf16>, vector<32x96xbf16>, vector<4x96xf32> -> vector<4x96xf32>
    %243 = vector.extract_strided_slice %242 {offsets = [0, 0], sizes = [4, 64], strides = [1, 1]} : vector<4x96xf32> to vector<4x64xf32>
    %244 = arith.addf %101, %243 : vector<4x64xf32>
    %245 = arith.negf %244 : vector<4x64xf32>
    %246 = math.exp %245 : vector<4x64xf32>
    %cst_73 = arith.constant 1.000000e+00 : f32
    %247 = vector.broadcast %cst_73 : f32 to vector<4x64xf32>
    %248 = arith.addf %247, %246 : vector<4x64xf32>
    %249 = arith.divf %247, %248 : vector<4x64xf32>
    %250 = vector.extract_strided_slice %249 {offsets = [0, 0], sizes = [4, 32], strides = [1, 1]} : vector<4x64xf32> to vector<4x32xf32>
    %251 = vector.extract_strided_slice %249 {offsets = [0, 32], sizes = [4, 32], strides = [1, 1]} : vector<4x64xf32> to vector<4x32xf32>
    %252 = vector.extract_strided_slice %242 {offsets = [0, 64], sizes = [4, 32], strides = [1, 1]} : vector<4x96xf32> to vector<4x32xf32>
    %253 = arith.addf %252, %7 : vector<4x32xf32>
    %254 = arith.mulf %250, %253 : vector<4x32xf32>
    %255 = arith.addf %102, %254 : vector<4x32xf32>
    %256 = math.tanh %255 : vector<4x32xf32>
    %cst_74 = arith.constant 1.000000e+00 : f32
    %257 = vector.broadcast %cst_74 : f32 to vector<4x32xf32>
    %258 = arith.subf %257, %251 : vector<4x32xf32>
    %259 = arith.mulf %258, %256 : vector<4x32xf32>
    %260 = arith.mulf %251, %240 : vector<4x32xf32>
    %261 = arith.addf %259, %260 : vector<4x32xf32>
    %262 = arith.truncf %261 : vector<4x32xf32> to vector<4x32xbf16>
    %cst_75 = arith.constant dense<0.000000e+00> : vector<4x96xf32>
    %263 = tpu.matmul %262, %2, %cst_75 {dimension_numbers = #tpu.dot_dimension_numbers<[1], [0], [0], [1], [0, 0, 1, 1], [], []>} : vector<4x32xbf16>, vector<32x96xbf16>, vector<4x96xf32> -> vector<4x96xf32>
    %264 = vector.extract_strided_slice %263 {offsets = [0, 0], sizes = [4, 64], strides = [1, 1]} : vector<4x96xf32> to vector<4x64xf32>
    %265 = arith.addf %111, %264 : vector<4x64xf32>
    %266 = arith.negf %265 : vector<4x64xf32>
    %267 = math.exp %266 : vector<4x64xf32>
    %cst_76 = arith.constant 1.000000e+00 : f32
    %268 = vector.broadcast %cst_76 : f32 to vector<4x64xf32>
    %269 = arith.addf %268, %267 : vector<4x64xf32>
    %270 = arith.divf %268, %269 : vector<4x64xf32>
    %271 = vector.extract_strided_slice %270 {offsets = [0, 0], sizes = [4, 32], strides = [1, 1]} : vector<4x64xf32> to vector<4x32xf32>
    %272 = vector.extract_strided_slice %270 {offsets = [0, 32], sizes = [4, 32], strides = [1, 1]} : vector<4x64xf32> to vector<4x32xf32>
    %273 = vector.extract_strided_slice %263 {offsets = [0, 64], sizes = [4, 32], strides = [1, 1]} : vector<4x96xf32> to vector<4x32xf32>
    %274 = arith.addf %273, %7 : vector<4x32xf32>
    %275 = arith.mulf %271, %274 : vector<4x32xf32>
    %276 = arith.addf %112, %275 : vector<4x32xf32>
    %277 = math.tanh %276 : vector<4x32xf32>
    %cst_77 = arith.constant 1.000000e+00 : f32
    %278 = vector.broadcast %cst_77 : f32 to vector<4x32xf32>
    %279 = arith.subf %278, %272 : vector<4x32xf32>
    %280 = arith.mulf %279, %277 : vector<4x32xf32>
    %281 = arith.mulf %272, %261 : vector<4x32xf32>
    %282 = arith.addf %280, %281 : vector<4x32xf32>
    %c16 = arith.constant 16 : index
    %c0_78 = arith.constant 0 : index
    %283 = vector.load %arg5[%c16, %c0_78] : memref<40x32xf32, #tpu.memory_space<vmem>>, vector<4x32xf32>
    tpu.vector_store %arg5[%c16, %c0_78], %282 {strides = array<i32>} : memref<40x32xf32, #tpu.memory_space<vmem>>, vector<4x32xf32>,
    %284 = arith.truncf %282 : vector<4x32xf32> to vector<4x32xbf16>
    %cst_79 = arith.constant dense<0.000000e+00> : vector<4x128xf32>
    %285 = tpu.matmul %284, %3, %cst_79 {dimension_numbers = #tpu.dot_dimension_numbers<[1], [0], [0], [1], [0, 0, 1, 1], [], []>} : vector<4x32xbf16>, vector<32x128xbf16>, vector<4x128xf32> -> vector<4x128xf32>
    %286 = vector.broadcast %8 : vector<1x128xf32> to vector<4x128xf32>
    %287 = arith.addf %285, %286 : vector<4x128xf32>
    %288 = vector.extract_strided_slice %287 {offsets = [0, 0], sizes = [4, 32], strides = [1, 1]} : vector<4x128xf32> to vector<4x32xf32>
    %c24 = arith.constant 24 : index
    %c0_80 = arith.constant 0 : index
    %289 = vector.load %arg5[%c24, %c0_80] : memref<40x32xf32, #tpu.memory_space<vmem>>, vector<4x32xf32>
    tpu.vector_store %arg5[%c24, %c0_80], %288 {strides = array<i32>} : memref<40x32xf32, #tpu.memory_space<vmem>>, vector<4x32xf32>,
    %290 = vector.extract_strided_slice %287 {offsets = [0, 32], sizes = [4, 32], strides = [1, 1]} : vector<4x128xf32> to vector<4x32xf32>
    %c28 = arith.constant 28 : index
    %c0_81 = arith.constant 0 : index
    %291 = vector.load %arg5[%c28, %c0_81] : memref<40x32xf32, #tpu.memory_space<vmem>>, vector<4x32xf32>
    tpu.vector_store %arg5[%c28, %c0_81], %290 {strides = array<i32>} : memref<40x32xf32, #tpu.memory_space<vmem>>, vector<4x32xf32>,
    %292 = vector.extract_strided_slice %287 {offsets = [0, 64], sizes = [4, 32], strides = [1, 1]} : vector<4x128xf32> to vector<4x32xf32>
    %c32 = arith.constant 32 : index
    %c0_82 = arith.constant 0 : index
    %293 = vector.load %arg5[%c32, %c0_82] : memref<40x32xf32, #tpu.memory_space<vmem>>, vector<4x32xf32>
    tpu.vector_store %arg5[%c32, %c0_82], %292 {strides = array<i32>} : memref<40x32xf32, #tpu.memory_space<vmem>>, vector<4x32xf32>,
    %294 = vector.extract_strided_slice %287 {offsets = [0, 96], sizes = [4, 32], strides = [1, 1]} : vector<4x128xf32> to vector<4x32xf32>
    %c36 = arith.constant 36 : index
    %c0_83 = arith.constant 0 : index
    %295 = vector.load %arg5[%c36, %c0_83] : memref<40x32xf32, #tpu.memory_space<vmem>>, vector<4x32xf32>
    tpu.vector_store %arg5[%c36, %c0_83], %294 {strides = array<i32>} : memref<40x32xf32, #tpu.memory_space<vmem>>, vector<4x32xf32>,
    return
  }
}

</mosaic_0001>

<bundles_post_ra>
// kernel: cpc_forward.1
= control target key start
LH: loop header
LB: loop body
LE: loop exit
PB: predicated region body
PF: predicated region fallthrough
CT: control target
= control target key end

     0   :  { %v1497_v0 = vmov 0.0   ;;  %vm1498_vm0 = vmmov 0   ;;  %vm83_vm1 = vcmask 261120   ;;  %s1501_s12 = smov 96   ;;  %vm46_vm2 = vcmask 257024   ;;  %s1819_s3 = inlined_call_operand.vmem [shape: bf16[32,384], index: 3, kind: input, shape index: {}]   ;;  %s1820_s0 = inlined_call_operand.<no memory space> [shape: s32[1], index: 0, kind: input, shape index: {}]   ;;  %s1821_s1 = inlined_call_operand.vmem [shape: f32[16,4,32], index: 1, kind: input, shape index: {}]   ;;  %s1822_s4 = inlined_call_operand.vmem [shape: f32[3,128], index: 4, kind: input, shape index: {}]   ;;  %s1823_s2 = inlined_call_operand.vmem [shape: f32[1,4,32], index: 2, kind: input, shape index: {}]   ;;  %s1824_s5 = inlined_call_operand.vmem [shape: f32[40,32], index: 5, kind: output, shape index: {}]  }
   0x1   :  { %1302 = vmatprep.subr.bf16.mxu0 %v1497_v0  ;;  %v1536_v1 = vld [vmem:[%s1819_s3] ss:$12 sps:$4 sm:$0xff]   ;;  %1306 = vmatprep.mubr.msk.bf16.mxu0 %vm1498_vm0, %v1497_v0  ;;  %v1543_v2 = vld [vmem:[%s1819_s3 + $0x18] ss:$12 sps:$4 sm:$0xff]   ;;  %s1195_s24 = sshll.u32 %s1820_s0, 2 }
   0x2   :  { %1310 = vmatprep.subr.bf16.mxu1 %v1497_v0  ;;  %1314 = vmatprep.mubr.msk.bf16.mxu1 %vm1498_vm0, %v1497_v0  ;;  %s1557_s27 = scalar_lea.vmem %s1821_s1, %s1195_s24  ;;  %v1194_v5 = vld [vmem:[%s1822_s4 + $0x1] ss:$0 sm:$0xff]  ;;  %s1499_s1 = smov 64   ;;  %v1595_v12 = vld [vmem:[%s1819_s3 + $0x4] ss:$12 sps:$4 sm:$0xff]  }
   0x3   :  { %1303 = vmatpush3.bf16.msra.mxu0 %v1536_v1  ;;  %1311 = vmatpush3.bf16.msra.mxu1 %v1536_v1  ;;  %v65_v3 = vld [vmem:[%s1557_s27] sm:$0xf]  ;;  %v1212_v6 = vld [vmem:[%s1557_s27 + $0x8] sm:$0xf]  ;;  %v1218_v8 = vld [vmem:[%s1557_s27 + $0x10] sm:$0xf] }
   0x4   :  { %1304 = vmatprep.subr.bf16.mxu0 %v1497_v0  ;;  %1312 = vmatprep.subr.bf16.mxu1 %v1497_v0  ;;  %v66_v4 = vpack.c.bf16 %v65_v3, %v65_v3  ;;  %v179_v7 = vpack.c.bf16 %v1212_v6, %v1212_v6  ;;  %v275_v9 = vpack.c.bf16 %v1218_v8, %v1218_v8  ;;  %v1224_v10 = vld [vmem:[%s1557_s27 + $0x18] sm:$0xf]  ;;  %v1603_v13 = vld [vmem:[%s1819_s3 + $0x1c] ss:$12 sps:$4 sm:$0xff]   ;;  %v463_v14 = vld [vmem:[%s1823_s2] sm:$0xf] }
   0x5   :  { %528 = vrot.lane.b32.xlu0 %v1194_v5, %s1499_s1  ;;  %v371_v11 = vpack.c.bf16 %v1224_v10, %v1224_v10  ;;  %v464_v15 = vpack.c.bf16 %v463_v14, %v463_v14  ;;  %s1500_s2 = smov 32   ;;  %v1634_v38 = vld [vmem:[%s1822_s4] ss:$0 sm:$0xff]  ;;  %v1209_v49 = vld [vmem:[%s1557_s27 + $0x4] sm:$0xf] }
   0x6   :  { %v131_v50 = vpack.c.bf16 %v1209_v49, %v1209_v49  ;;  %v1215_v51 = vld [vmem:[%s1557_s27 + $0xc] sm:$0xf]  ;;  %v1221_v54 = vld [vmem:[%s1557_s27 + $0x14] sm:$0xf]  ;;  %v1227_v56 = vld [vmem:[%s1557_s27 + $0x1c] sm:$0xf] }
   0x7   :  { %1305 = vmatpush3.bf16.msra.mxu0 %v1543_v2  ;;  %1313 = vmatpush3.bf16.msra.mxu1 %v1543_v2  ;;  %v227_v53 = vpack.c.bf16 %v1215_v51, %v1215_v51  ;;  %v323_v55 = vpack.c.bf16 %v1221_v54, %v1221_v54  ;;  %v419_v57 = vpack.c.bf16 %v1227_v56, %v1227_v56 }
   0x8   :  { %1318 = vmatprep.subr.bf16.mxu0 %v1497_v0  ;;  %1326 = vmatprep.subr.bf16.mxu1 %v1497_v0 }
   0xa   :  { %1307 = vmatmul.mubr.msk.bf16.vlgmr.msra.gmra.mrb[0].mxu0 %vm83_vm1, %v66_v4  ;;  %1315 = vmatmul.mubr.msk.bf16.vlgmr.msra.gmra.mrb[0].mxu1 %vm83_vm1, %v131_v50 }
   0xb   :  { %1319 = vmatpush3.bf16.msra.mxu0 %v1536_v1  ;;  %1322 = vmatprep.mubr.msk.bf16.mxu0 %vm1498_vm0, %v1497_v0 }
   0xc   :  { %1320 = vmatprep.subr.bf16.mxu0 %v1497_v0  ;;  %1327 = vmatpush3.bf16.msra.mxu1 %v1536_v1 }
   0xd   :  { %1330 = vmatprep.mubr.msk.bf16.mxu1 %vm1498_vm0, %v1497_v0  ;;  %1328 = vmatprep.subr.bf16.mxu1 %v1497_v0 }
   0xf   :  { %1321 = vmatpush3.bf16.msra.mxu0 %v1543_v2 }
  0x10   :  { %1334 = vmatprep.subr.bf16.mxu0 %v1497_v0  ;;  %1329 = vmatpush3.bf16.msra.mxu1 %v1543_v2 }
  0x11   :  { %1342 = vmatprep.subr.bf16.mxu1 %v1497_v0 }
  0x12   :  { %1323 = vmatmul.mubr.msk.bf16.vlgmr.msra.gmra.mrb[4].mxu0 %vm83_vm1, %v179_v7 }
  0x13   :  { %1335 = vmatpush3.bf16.msra.mxu0 %v1536_v1  ;;  %1338 = vmatprep.mubr.msk.bf16.mxu0 %vm1498_vm0, %v1497_v0 }
  0x14   :  { %1336 = vmatprep.subr.bf16.mxu0 %v1497_v0  ;;  %1331 = vmatmul.mubr.msk.bf16.vlgmr.msra.gmra.mrb[4].mxu1 %vm83_vm1, %v227_v53 }
  0x15   :  { %1343 = vmatpush3.bf16.msra.mxu1 %v1536_v1  ;;  %1346 = vmatprep.mubr.msk.bf16.mxu1 %vm1498_vm0, %v1497_v0 }
  0x16   :  { %1344 = vmatprep.subr.bf16.mxu1 %v1497_v0 }
  0x17   :  { %1337 = vmatpush3.bf16.msra.mxu0 %v1543_v2 }
  0x18   :  { %1350 = vmatprep.subr.bf16.mxu0 %v1497_v0 }
  0x19   :  { %1345 = vmatpush3.bf16.msra.mxu1 %v1543_v2 }
  0x1a   :  { %1339 = vmatmul.mubr.msk.bf16.vlgmr.msra.gmra.mrb[8].mxu0 %vm83_vm1, %v275_v9  ;;  %1358 = vmatprep.subr.bf16.mxu1 %v1497_v0 }
  0x1b   :  { %1351 = vmatpush3.bf16.msra.mxu0 %v1536_v1  ;;  %1354 = vmatprep.mubr.msk.bf16.mxu0 %vm1498_vm0, %v1497_v0 }
  0x1c   :  { %1352 = vmatprep.subr.bf16.mxu0 %v1497_v0  ;;  %1347 = vmatmul.mubr.msk.bf16.vlgmr.msra.gmra.mrb[8].mxu1 %vm83_vm1, %v323_v55 }
  0x1d   :  { %1359 = vmatpush3.bf16.msra.mxu1 %v1536_v1  ;;  %1362 = vmatprep.mubr.msk.bf16.mxu1 %vm1498_vm0, %v1497_v0 }
  0x1e   :  { %1360 = vmatprep.subr.bf16.mxu1 %v1497_v0 }
  0x1f   :  { %1353 = vmatpush3.bf16.msra.mxu0 %v1543_v2 }
  0x20   :  { %1366 = vmatprep.subr.bf16.mxu0 %v1497_v0 }
  0x21   :  { %1361 = vmatpush3.bf16.msra.mxu1 %v1543_v2 }
  0x22   :  { %1355 = vmatmul.mubr.msk.bf16.vlgmr.msra.gmra.mrb[12].mxu0 %vm83_vm1, %v371_v11  ;;  %1374 = vmatprep.subr.bf16.mxu1 %v1497_v0 }
  0x23   :  { %1367 = vmatpush3.bf16.msra.mxu0 %v1595_v12  ;;  %1370 = vmatprep.mubr.msk.bf16.mxu0 %vm1498_vm0, %v1497_v0 }
  0x24   :  { %1368 = vmatprep.subr.bf16.mxu0 %v1497_v0  ;;  %1363 = vmatmul.mubr.msk.bf16.vlgmr.msra.gmra.mrb[12].mxu1 %vm83_vm1, %v419_v57 }
  0x25   :  { %1375 = vmatpush3.bf16.msra.mxu1 %v1595_v12  ;;  %1378 = vmatprep.mubr.msk.bf16.mxu1 %vm1498_vm0, %v1497_v0 }
  0x26   :  { %1376 = vmatprep.subr.bf16.mxu1 %v1497_v0 }
  0x27   :  { %1369 = vmatpush3.bf16.msra.mxu0 %v1603_v13 }
  0x28   :  { %1382 = vmatprep.subr.bf16.mxu0 %v1497_v0 }
  0x29   :  { %1377 = vmatpush3.bf16.msra.mxu1 %v1603_v13 }
  0x2a   :  { %1371 = vmatmul.mubr.msk.bf16.vlgmr.msra.gmra.mrb[16].mxu0 %vm83_vm1, %v464_v15  ;;  %1390 = vmatprep.subr.bf16.mxu1 %v1497_v0 }
  0x2b   :  { %1383 = vmatpush3.bf16.msra.mxu0 %v1595_v12  ;;  %1386 = vmatprep.mubr.msk.bf16.mxu0 %vm1498_vm0, %v1497_v0 }
  0x2c   :  { %1384 = vmatprep.subr.bf16.mxu0 %v1497_v0 }
  0x2f   :  { %1385 = vmatpush3.bf16.msra.mxu0 %v1603_v13 }
  0x30   :  { %1398 = vmatprep.subr.bf16.mxu0 %v1497_v0 }
  0x77   :  { %v1626_v32 = vpop.permute.xlu0 %528 }
  0xdd   :  { %v121_v16 = vpop.f32.mrb[0].mxu0  ;;  %v169_v2 = vpop.f32.mrb[0].mxu1 }
  0xde   :  { %v1308_v17 = vpop.f32.mrb[1].mxu0  ;;  %v122_v39 = vadd.f32 %v1634_v38, %v121_v16  ;;  %v1316_v3 = vpop.f32.mrb[1].mxu1 }
  0xdf   :  { %v124_v18 = vpop.f32.mrb[2].mxu0  ;;  %v172_v4 = vpop.f32.mrb[2].mxu1 }
  0xe0   :  { %v1309_v19 = vpop.f32.mrb[3].mxu0  ;;  %v1317_v5 = vpop.f32.mrb[3].mxu1 }
  0xe5   :  { %v1620_v20 = vpop.f32.mrb[4].mxu0 }
  0xe6   :  { %v1324_v21 = vpop.f32.mrb[5].mxu0  ;;  %v218_v54 = vadd.f32 %v1634_v38, %v1620_v20 }
  0xe7   :  { %v220_v22 = vpop.f32.mrb[6].mxu0  ;;  %v1672_v6 = vpop.f32.mrb[4].mxu1 }
  0xe8   :  { %v1325_v23 = vpop.f32.mrb[7].mxu0  ;;  %v1332_v7 = vpop.f32.mrb[5].mxu1 }
  0xe9   :  { %v268_v8 = vpop.f32.mrb[6].mxu1 }
  0xea   :  { %v1333_v9 = vpop.f32.mrb[7].mxu1 }
  0xed   :  { %v1622_v24 = vpop.f32.mrb[8].mxu0 }
  0xee   :  { %v1340_v25 = vpop.f32.mrb[9].mxu0 }
  0xef   :  { %v316_v26 = vpop.f32.mrb[10].mxu0  ;;  %v1674_v10 = vpop.f32.mrb[8].mxu1 }
  0xf0   :  { %v1341_v27 = vpop.f32.mrb[11].mxu0  ;;  %v1348_v11 = vpop.f32.mrb[9].mxu1 }
  0xf5   :  { %v1624_v28 = vpop.f32.mrb[12].mxu0 }
  0xf6   :  { %v1356_v29 = vpop.f32.mrb[13].mxu0 }
  0xf7   :  { %v412_v30 = vpop.f32.mrb[14].mxu0  ;;  %v170_v29 = vadd.f32 %v1634_v38, %v169_v2 }
  0xf8   :  { %v1357_v31 = vpop.f32.mrb[15].mxu0 }
  0xfd   :  { %v514_v33 = vpop.f32.mrb[16].mxu0 }
  0xfe   :  { %v531_v34 = vadd.f32 %v1626_v32, %v514_v33  ;;  %v1372_v35 = vpop.f32.mrb[17].mxu0  ;;  %v520_v40 = vadd.f32 %v514_v33, %v122_v39 }
  0xff   :  { %v517_v36 = vpop.f32.mrb[18].mxu0 }
 0x100   :  { %533 = vrot.lane.b32.xlu0 %v531_v34, %s1499_s1  ;;  %v1373_v37 = vpop.f32.mrb[19].mxu0  ;;  %v1232_v41 = vmul.f32 -1.442695, %v520_v40 }
 0x102   :  { %1449 = vpow2.f32 %v1232_v41 }
 0x104   :  { %550 = vrot.lane.b32.xlu0 %v463_v14, %s1500_s2  ;;  %v364_v14 = vpop.f32.mrb[10].mxu1 }
 0x105   :  { %v1349_v15 = vpop.f32.mrb[11].mxu1 }
 0x106   :  { %v1676_v16 = vpop.f32.mrb[12].mxu1 }
 0x107   :  { %v1364_v17 = vpop.f32.mrb[13].mxu1 }
 0x108   :  { %v460_v18 = vpop.f32.mrb[14].mxu1 }
 0x109   :  { %v1365_v19 = vpop.f32.mrb[15].mxu1  ;;  %v266_v18 = vadd.f32 %v1634_v38, %v1672_v6 }
 0x10c   :  { %v1450_v42 = vpop.eup %1449 }
 0x10d   :  { %v524_v43 = vadd.f32 1.0, %v1450_v42 }
 0x10f   :  { %1451 = vrcp.f32 %v524_v43 }
 0x119   :  { %v1452_v44 = vpop.eup %1451 }
 0x11a   :  { %v543_v59 = vsub.f32 1.0, %v1452_v44 }
 0x172   :  { %v534_v45 = vpop.permute.xlu0 %533 }
 0x173   :  { %v536_v46 = vmul.f32 %v1452_v44, %v534_v45 }
 0x175   :  { %538 = vrot.lane.b32.xlu1 %v536_v46, %s1499_s1 }
 0x176   :  { %v551_v58 = vpop.permute.xlu0 %550 }
 0x177   :  { %v553_v61 = vmul.f32 %v1452_v44, %v551_v58 }
 0x1e7   :  { %v539_v47 = vpop.permute.xlu1 %538 }
 0x1e8   :  { %v541_v48 = vadd.f32 %v539_v47, %v122_v39 }
 0x1ea   :  { %1453 = vtanh.f32 %v541_v48 }
 0x1f4   :  { %v1454_v52 = vpop.eup %1453 }
 0x1f5   :  { %545 = vrot.lane.b32.xlu1 %v1454_v52, %s1501_s12 }
 0x267   :  { %v546_v60 = vpop.permute.xlu1 %545 }
 0x268   :  { %v548_v62 = vmul.f32 %v546_v60, %v543_v59 }
 0x26a   :  { %v554_v63 = vadd.f32 %v553_v61, %v548_v62 }
 0x26c   :  { %v555_v1 = vpack.c.bf16 %v554_v63, %v554_v63 }
 0x26e   :  { %557 = vrot.lane.b32.xlu1 %v555_v1, %s1501_s12 }
 0x2e0   :  { %v558_v21 = vpop.permute.xlu1 %557 }
 0x2e1   :  { %1379 = vmatmul.mubr.msk.bf16.vlgmr.msra.gmra.mrb[16].mxu1 %vm83_vm1, %v558_v21 }
 0x2e2   :  { %1391 = vmatpush3.bf16.msra.mxu1 %v1595_v12  ;;  %1394 = vmatprep.mubr.msk.bf16.mxu1 %vm1498_vm0, %v1497_v0 }
 0x2e3   :  { %1392 = vmatprep.subr.bf16.mxu1 %v1497_v0 }
 0x2e6   :  { %1393 = vmatpush3.bf16.msra.mxu1 %v1603_v13 }
 0x2e7   :  { %1406 = vmatprep.subr.bf16.mxu1 %v1497_v0 }
 0x3b4   :  { %v596_v22 = vpop.f32.mrb[16].mxu1 }
 0x3b5   :  { %v609_v23 = vadd.f32 %v596_v22, %v1626_v32  ;;  %v1380_v25 = vpop.f32.mrb[17].mxu1  ;;  %v602_v30 = vadd.f32 %v596_v22, %v170_v29 }
 0x3b6   :  { %v599_v26 = vpop.f32.mrb[18].mxu1 }
 0x3b7   :  { %611 = vrot.lane.b32.xlu0 %v609_v23, %s1499_s1  ;;  %v1381_v27 = vpop.f32.mrb[19].mxu1  ;;  %v1234_v31 = vmul.f32 -1.442695, %v602_v30 }
 0x3b9   :  { %1455 = vpow2.f32 %v1234_v31 }
 0x3c3   :  { %v1456_v33 = vpop.eup %1455 }
 0x3c4   :  { %v606_v34 = vadd.f32 1.0, %v1456_v33 }
 0x3c6   :  { %1457 = vrcp.f32 %v606_v34 }
 0x3d0   :  { %v1458_v35 = vpop.eup %1457 }
 0x3d1   :  { %v621_v42 = vsub.f32 1.0, %v1458_v35  ;;  %v627_v44 = vmul.f32 %v1458_v35, %v554_v63 }
 0x429   :  { %v612_v36 = vpop.permute.xlu0 %611 }
 0x42a   :  { %v614_v37 = vmul.f32 %v1458_v35, %v612_v36 }
 0x42c   :  { %616 = vrot.lane.b32.xlu1 %v614_v37, %s1499_s1 }
 0x49e   :  { %v617_v39 = vpop.permute.xlu1 %616 }
 0x49f   :  { %v619_v40 = vadd.f32 %v617_v39, %v170_v29 }
 0x4a1   :  { %1459 = vtanh.f32 %v619_v40 }
 0x4ab   :  { %v1460_v41 = vpop.eup %1459 }
 0x4ac   :  { %623 = vrot.lane.b32.xlu0 %v1460_v41, %s1501_s12 }
 0x51e   :  { %v624_v43 = vpop.permute.xlu0 %623 }
 0x51f   :  { %v626_v45 = vmul.f32 %v624_v43, %v621_v42 }
 0x521   :  { %v628_v46 = vadd.f32 %v627_v44, %v626_v45  ;;  %v314_v45 = vadd.f32 %v1634_v38, %v1622_v24 }
 0x523   :  { %v629_v47 = vpack.c.bf16 %v628_v46, %v628_v46 }
 0x525   :  { %631 = vrot.lane.b32.xlu1 %v629_v47, %s1501_s12 }
 0x597   :  { %v632_v48 = vpop.permute.xlu1 %631 }
 0x598   :  { %1387 = vmatmul.mubr.msk.bf16.vlgmr.msra.gmra.mrb[20].mxu0 %vm83_vm1, %v632_v48 }
 0x599   :  { %1399 = vmatpush3.bf16.msra.mxu0 %v1595_v12  ;;  %1402 = vmatprep.mubr.msk.bf16.mxu0 %vm1498_vm0, %v1497_v0 }
 0x59a   :  { %1400 = vmatprep.subr.bf16.mxu0 %v1497_v0 }
 0x59d   :  { %1401 = vmatpush3.bf16.msra.mxu0 %v1603_v13 }
 0x59e   :  { %1414 = vmatprep.subr.bf16.mxu0 %v1497_v0 }
 0x66b   :  { %v670_v49 = vpop.f32.mrb[20].mxu0 }
 0x66c   :  { %v683_v50 = vadd.f32 %v670_v49, %v1626_v32  ;;  %v1388_v51 = vpop.f32.mrb[21].mxu0  ;;  %v676_v55 = vadd.f32 %v670_v49, %v218_v54 }
 0x66d   :  { %v673_v52 = vpop.f32.mrb[22].mxu0 }
 0x66e   :  { %685 = vrot.lane.b32.xlu0 %v683_v50, %s1499_s1  ;;  %v1389_v53 = vpop.f32.mrb[23].mxu0  ;;  %v1236_v56 = vmul.f32 -1.442695, %v676_v55 }
 0x670   :  { %1461 = vpow2.f32 %v1236_v56 }
 0x67a   :  { %v1462_v57 = vpop.eup %1461 }
 0x67b   :  { %v680_v58 = vadd.f32 1.0, %v1462_v57 }
 0x67d   :  { %1463 = vrcp.f32 %v680_v58 }
 0x687   :  { %v1464_v59 = vpop.eup %1463 }
 0x688   :  { %v695_v2 = vsub.f32 1.0, %v1464_v59  ;;  %v701_v20 = vmul.f32 %v1464_v59, %v628_v46 }
 0x6e0   :  { %v686_v60 = vpop.permute.xlu0 %685 }
 0x6e1   :  { %v688_v61 = vmul.f32 %v1464_v59, %v686_v60 }
 0x6e3   :  { %690 = vrot.lane.b32.xlu1 %v688_v61, %s1499_s1 }
 0x755   :  { %v691_v62 = vpop.permute.xlu1 %690 }
 0x756   :  { %v693_v63 = vadd.f32 %v691_v62, %v218_v54 }
 0x758   :  { %1465 = vtanh.f32 %v693_v63 }
 0x762   :  { %v1466_v1 = vpop.eup %1465 }
 0x763   :  { %697 = vrot.lane.b32.xlu0 %v1466_v1, %s1501_s12 }
 0x7d5   :  { %v698_v3 = vpop.permute.xlu0 %697 }
 0x7d6   :  { %v700_v4 = vmul.f32 %v698_v3, %v695_v2 }
 0x7d8   :  { %v702_v5 = vadd.f32 %v701_v20, %v700_v4  ;;  %v362_v20 = vadd.f32 %v1634_v38, %v1674_v10 }
 0x7da   :  { %v703_v7 = vpack.c.bf16 %v702_v5, %v702_v5 }
 0x7dc   :  { %705 = vrot.lane.b32.xlu1 %v703_v7, %s1501_s12 }
 0x84e   :  { %v706_v8 = vpop.permute.xlu1 %705 }
 0x84f   :  { %1395 = vmatmul.mubr.msk.bf16.vlgmr.msra.gmra.mrb[20].mxu1 %vm83_vm1, %v706_v8 }
 0x850   :  { %1407 = vmatpush3.bf16.msra.mxu1 %v1595_v12  ;;  %1410 = vmatprep.mubr.msk.bf16.mxu1 %vm1498_vm0, %v1497_v0 }
 0x851   :  { %1408 = vmatprep.subr.bf16.mxu1 %v1497_v0 }
 0x854   :  { %1409 = vmatpush3.bf16.msra.mxu1 %v1603_v13 }
 0x855   :  { %1422 = vmatprep.subr.bf16.mxu1 %v1497_v0 }
 0x922   :  { %v744_v9 = vpop.f32.mrb[20].mxu1 }
 0x923   :  { %v757_v11 = vadd.f32 %v744_v9, %v1626_v32  ;;  %v1396_v14 = vpop.f32.mrb[21].mxu1  ;;  %v750_v19 = vadd.f32 %v744_v9, %v266_v18 }
 0x924   :  { %v747_v15 = vpop.f32.mrb[22].mxu1 }
 0x925   :  { %759 = vrot.lane.b32.xlu0 %v757_v11, %s1499_s1  ;;  %v1397_v17 = vpop.f32.mrb[23].mxu1  ;;  %v1238_v21 = vmul.f32 -1.442695, %v750_v19 }
 0x927   :  { %1467 = vpow2.f32 %v1238_v21 }
 0x931   :  { %v1468_v22 = vpop.eup %1467 }
 0x932   :  { %v754_v23 = vadd.f32 1.0, %v1468_v22 }
 0x934   :  { %1469 = vrcp.f32 %v754_v23 }
 0x93e   :  { %v1470_v25 = vpop.eup %1469 }
 0x93f   :  { %v769_v33 = vsub.f32 1.0, %v1470_v25  ;;  %v775_v6 = vmul.f32 %v1470_v25, %v702_v5 }
 0x997   :  { %v760_v26 = vpop.permute.xlu0 %759 }
 0x998   :  { %v762_v27 = vmul.f32 %v1470_v25, %v760_v26 }
 0x99a   :  { %764 = vrot.lane.b32.xlu1 %v762_v27, %s1499_s1 }
 0xa0c   :  { %v765_v29 = vpop.permute.xlu1 %764 }
 0xa0d   :  { %v767_v30 = vadd.f32 %v765_v29, %v266_v18 }
 0xa0f   :  { %1471 = vtanh.f32 %v767_v30 }
 0xa19   :  { %v1472_v31 = vpop.eup %1471 }
 0xa1a   :  { %771 = vrot.lane.b32.xlu0 %v1472_v31, %s1501_s12  ;;  %v410_v31 = vadd.f32 %v1634_v38, %v1624_v28 }
 0xa8c   :  { %v772_v34 = vpop.permute.xlu0 %771 }
 0xa8d   :  { %v774_v35 = vmul.f32 %v772_v34, %v769_v33 }
 0xa8f   :  { %v776_v36 = vadd.f32 %v775_v6, %v774_v35 }
 0xa91   :  { %v777_v37 = vpack.c.bf16 %v776_v36, %v776_v36 }
 0xa93   :  { %779 = vrot.lane.b32.xlu1 %v777_v37, %s1501_s12 }
 0xb05   :  { %v780_v39 = vpop.permute.xlu1 %779 }
 0xb06   :  { %1403 = vmatmul.mubr.msk.bf16.vlgmr.msra.gmra.mrb[24].mxu0 %vm83_vm1, %v780_v39 }
 0xb07   :  { %1415 = vmatpush3.bf16.msra.mxu0 %v1595_v12  ;;  %1418 = vmatprep.mubr.msk.bf16.mxu0 %vm1498_vm0, %v1497_v0 }
 0xb08   :  { %1416 = vmatprep.subr.bf16.mxu0 %v1497_v0 }
 0xb0b   :  { %1417 = vmatpush3.bf16.msra.mxu0 %v1603_v13 }
 0xb0c   :  { %1430 = vmatprep.subr.bf16.mxu0 %v1497_v0 }
 0xbd9   :  { %v818_v40 = vpop.f32.mrb[24].mxu0 }
 0xbda   :  { %v831_v41 = vadd.f32 %v818_v40, %v1626_v32  ;;  %v1404_v42 = vpop.f32.mrb[25].mxu0  ;;  %v824_v46 = vadd.f32 %v818_v40, %v314_v45 }
 0xbdb   :  { %v821_v43 = vpop.f32.mrb[26].mxu0 }
 0xbdc   :  { %833 = vrot.lane.b32.xlu0 %v831_v41, %s1499_s1  ;;  %v1405_v44 = vpop.f32.mrb[27].mxu0  ;;  %v1240_v47 = vmul.f32 -1.442695, %v824_v46 }
 0xbde   :  { %1473 = vpow2.f32 %v1240_v47 }
 0xbe8   :  { %v1474_v48 = vpop.eup %1473 }
 0xbe9   :  { %v828_v49 = vadd.f32 1.0, %v1474_v48 }
 0xbeb   :  { %1475 = vrcp.f32 %v828_v49 }
 0xbf5   :  { %v1476_v50 = vpop.eup %1475 }
 0xbf6   :  { %v843_v56 = vsub.f32 1.0, %v1476_v50  ;;  %v849_v24 = vmul.f32 %v1476_v50, %v776_v36 }
 0xc4e   :  { %v834_v51 = vpop.permute.xlu0 %833 }
 0xc4f   :  { %v836_v52 = vmul.f32 %v1476_v50, %v834_v51 }
 0xc51   :  { %838 = vrot.lane.b32.xlu1 %v836_v52, %s1499_s1 }
 0xcc3   :  { %v839_v53 = vpop.permute.xlu1 %838 }
 0xcc4   :  { %v841_v54 = vadd.f32 %v839_v53, %v314_v45 }
 0xcc6   :  { %1477 = vtanh.f32 %v841_v54  ;;  %v458_v54 = vadd.f32 %v1634_v38, %v1676_v16  ;;  %v1447_v38 = vld [vmem:[%s1819_s3 + $0x8] ss:$12 sps:$4 sm:$0xff]   ;;  %v1448_v16 = vld [vmem:[%s1819_s3 + $0x20] ss:$12 sps:$4 sm:$0xff]  }
 0xcd0   :  { %v1478_v55 = vpop.eup %1477 }
 0xcd1   :  { %845 = vrot.lane.b32.xlu0 %v1478_v55, %s1501_s12 }
 0xd43   :  { %v846_v57 = vpop.permute.xlu0 %845 }
 0xd44   :  { %v848_v58 = vmul.f32 %v846_v57, %v843_v56 }
 0xd46   :  { %v850_v59 = vadd.f32 %v849_v24, %v848_v58 }
 0xd48   :  { %v851_v60 = vpack.c.bf16 %v850_v59, %v850_v59 }
 0xd4a   :  { %853 = vrot.lane.b32.xlu1 %v851_v60, %s1501_s12 }
 0xdbc   :  { %v854_v61 = vpop.permute.xlu1 %853 }
 0xdbd   :  { %1411 = vmatmul.mubr.msk.bf16.vlgmr.msra.gmra.mrb[24].mxu1 %vm83_vm1, %v854_v61 }
 0xdbe   :  { %1423 = vmatpush3.bf16.msra.mxu1 %v1595_v12  ;;  %1426 = vmatprep.mubr.msk.bf16.mxu1 %vm1498_vm0, %v1497_v0 }
 0xdbf   :  { %1424 = vmatprep.subr.bf16.mxu1 %v1497_v0 }
 0xdc2   :  { %1425 = vmatpush3.bf16.msra.mxu1 %v1603_v13 }
 0xe90   :  { %v892_v62 = vpop.f32.mrb[24].mxu1 }
 0xe91   :  { %v905_v63 = vadd.f32 %v892_v62, %v1626_v32  ;;  %v1412_v1 = vpop.f32.mrb[25].mxu1  ;;  %v898_v4 = vadd.f32 %v892_v62, %v362_v20 }
 0xe92   :  { %v895_v2 = vpop.f32.mrb[26].mxu1  ;;  %v1198_v1 = vld [vmem:[%s1557_s27 + $0x24] sm:$0xf] }
 0xe93   :  { %907 = vrot.lane.b32.xlu0 %v905_v63, %s1499_s1  ;;  %v1413_v3 = vpop.f32.mrb[27].mxu1  ;;  %v1242_v12 = vmul.f32 -1.442695, %v898_v4  ;;  %v1196_v63 = vld [vmem:[%s1557_s27 + $0x20] sm:$0xf] }
 0xe94   :  { %v1200_v2 = vld [vmem:[%s1557_s27 + $0x28] sm:$0xf]  ;;  %47 = vst.msk [vmem:[%s1824_s5] sm:$0xf] %vm46_vm2, %v1196_v63  ;;  %52 = vst.msk [vmem:[%s1824_s5 + $0x4] sm:$0xf] %vm46_vm2, %v1198_v1 }
 0xe95   :  { %1479 = vpow2.f32 %v1242_v12  ;;  %57 = vst.msk [vmem:[%s1824_s5 + $0x8] sm:$0xf] %vm46_vm2, %v1200_v2 }
 0xe9f   :  { %v1480_v5 = vpop.eup %1479 }
 0xea0   :  { %v902_v7 = vadd.f32 1.0, %v1480_v5 }
 0xea2   :  { %1481 = vrcp.f32 %v902_v7 }
 0xeac   :  { %v1482_v8 = vpop.eup %1481 }
 0xead   :  { %v917_v17 = vsub.f32 1.0, %v1482_v8  ;;  %v923_v10 = vmul.f32 %v1482_v8, %v850_v59 }
 0xf05   :  { %v908_v9 = vpop.permute.xlu0 %907 }
 0xf06   :  { %v910_v13 = vmul.f32 %v1482_v8, %v908_v9 }
 0xf08   :  { %912 = vrot.lane.b32.xlu1 %v910_v13, %s1499_s1  ;;  %v1247_v13 = vld [vmem:[%s1822_s4 + $0x2] ss:$0 sm:$0xff] }
 0xf7a   :  { %v913_v11 = vpop.permute.xlu1 %912 }
 0xf7b   :  { %v915_v14 = vadd.f32 %v913_v11, %v362_v20 }
 0xf7d   :  { %1483 = vtanh.f32 %v915_v14 }
 0xf87   :  { %v1484_v15 = vpop.eup %1483 }
 0xf88   :  { %919 = vrot.lane.b32.xlu0 %v1484_v15, %s1501_s12 }
 0xffa   :  { %v920_v18 = vpop.permute.xlu0 %919 }
 0xffb   :  { %v922_v19 = vmul.f32 %v920_v18, %v917_v17 }
 0xffd   :  { %v924_v21 = vadd.f32 %v923_v10, %v922_v19 }
 0xfff   :  { %v925_v22 = vpack.c.bf16 %v924_v21, %v924_v21 }
0x1001   :  { %927 = vrot.lane.b32.xlu1 %v925_v22, %s1501_s12 }
0x1073   :  { %v928_v23 = vpop.permute.xlu1 %927 }
0x1074   :  { %1419 = vmatmul.mubr.msk.bf16.vlgmr.msra.gmra.mrb[28].mxu0 %vm83_vm1, %v928_v23 }
0x1075   :  { %1434 = vmatprep.mubr.msk.bf16.mxu0 %vm1498_vm0, %v1497_v0  ;;  %1431 = vmatpush3.bf16.msra.mxu0 %v1447_v38 }
0x1076   :  { %1432 = vmatprep.subr.bf16.mxu0 %v1497_v0  ;;  %v1202_v0 = vld [vmem:[%s1557_s27 + $0x2c] sm:$0xf] }
0x1077   :  { %62 = vst.msk [vmem:[%s1824_s5 + $0xc] sm:$0xf] %vm46_vm2, %v1202_v0 }
0x1079   :  { %1433 = vmatpush3.bf16.msra.mxu0 %v1448_v16 }
0x1147   :  { %v966_v25 = vpop.f32.mrb[28].mxu0 }
0x1148   :  { %v979_v26 = vadd.f32 %v966_v25, %v1626_v32  ;;  %v1420_v27 = vpop.f32.mrb[29].mxu0  ;;  %v972_v33 = vadd.f32 %v966_v25, %v410_v31 }
0x1149   :  { %v969_v29 = vpop.f32.mrb[30].mxu0 }
0x114a   :  { %981 = vrot.lane.b32.xlu0 %v979_v26, %s1499_s1  ;;  %v1421_v30 = vpop.f32.mrb[31].mxu0  ;;  %v1244_v34 = vmul.f32 -1.442695, %v972_v33 }
0x114c   :  { %1485 = vpow2.f32 %v1244_v34 }
0x1156   :  { %v1486_v6 = vpop.eup %1485 }
0x1157   :  { %v976_v35 = vadd.f32 1.0, %v1486_v6 }
0x1159   :  { %1487 = vrcp.f32 %v976_v35 }
0x1163   :  { %v1488_v36 = vpop.eup %1487 }
0x1164   :  { %v991_v43 = vsub.f32 1.0, %v1488_v36  ;;  %v997_v28 = vmul.f32 %v1488_v36, %v924_v21 }
0x11bc   :  { %v982_v37 = vpop.permute.xlu0 %981 }
0x11bd   :  { %v984_v39 = vmul.f32 %v1488_v36, %v982_v37 }
0x11bf   :  { %986 = vrot.lane.b32.xlu1 %v984_v39, %s1499_s1 }
0x1231   :  { %v987_v40 = vpop.permute.xlu1 %986 }
0x1232   :  { %v989_v41 = vadd.f32 %v987_v40, %v410_v31 }
0x1234   :  { %1489 = vtanh.f32 %v989_v41 }
0x123e   :  { %v1490_v42 = vpop.eup %1489 }
0x123f   :  { %993 = vrot.lane.b32.xlu0 %v1490_v42, %s1501_s12 }
0x12b1   :  { %v994_v44 = vpop.permute.xlu0 %993 }
0x12b2   :  { %v996_v45 = vmul.f32 %v994_v44, %v991_v43 }
0x12b4   :  { %v998_v46 = vadd.f32 %v997_v28, %v996_v45 }
0x12b6   :  { %v999_v47 = vpack.c.bf16 %v998_v46, %v998_v46 }
0x12b8   :  { %1001 = vrot.lane.b32.xlu1 %v999_v47, %s1501_s12 }
0x132a   :  { %v1002_v48 = vpop.permute.xlu1 %1001 }
0x132b   :  { %1427 = vmatmul.mubr.msk.bf16.vlgmr.msra.gmra.mrb[28].mxu1 %vm83_vm1, %v1002_v48 }
0x13fe   :  { %v1040_v49 = vpop.f32.mrb[28].mxu1 }
0x13ff   :  { %v1053_v50 = vadd.f32 %v1040_v49, %v1626_v32  ;;  %v1428_v51 = vpop.f32.mrb[29].mxu1  ;;  %v1046_v55 = vadd.f32 %v1040_v49, %v458_v54 }
0x1400   :  { %v1043_v52 = vpop.f32.mrb[30].mxu1 }
0x1401   :  { %1055 = vrot.lane.b32.xlu0 %v1053_v50, %s1499_s1  ;;  %v1429_v53 = vpop.f32.mrb[31].mxu1  ;;  %v1246_v56 = vmul.f32 -1.442695, %v1046_v55 }
0x1403   :  { %1491 = vpow2.f32 %v1246_v56 }
0x140d   :  { %v1492_v57 = vpop.eup %1491 }
0x140e   :  { %v1050_v24 = vadd.f32 1.0, %v1492_v57 }
0x1410   :  { %1493 = vrcp.f32 %v1050_v24 }
0x141a   :  { %v1494_v58 = vpop.eup %1493 }
0x141b   :  { %v1065_v3 = vsub.f32 1.0, %v1494_v58  ;;  %v1071_v4 = vmul.f32 %v1494_v58, %v998_v46 }
0x1473   :  { %v1056_v59 = vpop.permute.xlu0 %1055 }
0x1474   :  { %v1058_v32 = vmul.f32 %v1494_v58, %v1056_v59 }
0x1476   :  { %1060 = vrot.lane.b32.xlu1 %v1058_v32, %s1499_s1 }
0x14e8   :  { %v1061_v60 = vpop.permute.xlu1 %1060 }
0x14e9   :  { %v1063_v61 = vadd.f32 %v1061_v60, %v458_v54 }
0x14eb   :  { %1495 = vtanh.f32 %v1063_v61 }
0x14f5   :  { %v1496_v62 = vpop.eup %1495 }
0x14f6   :  { %1067 = vrot.lane.b32.xlu0 %v1496_v62, %s1501_s12 }
0x1568   :  { %v1068_v20 = vpop.permute.xlu0 %1067 }
0x1569   :  { %v1070_v12 = vmul.f32 %v1068_v20, %v1065_v3 }
0x156b   :  { %v1072_v5 = vadd.f32 %v1071_v4, %v1070_v12 }
0x156d   :  { %1074 = vrot.lane.b32.xlu0 %v1072_v5, %s1501_s12  ;;  %v1078_v7 = vpack.c.bf16 %v1072_v5, %v1072_v5 }
0x156f   :  { %1084 = vrot.lane.b32.xlu1 %v1078_v7, %s1501_s12 }
0x15df   :  { %v1075_v8 = vpop.permute.xlu0 %1074 }
0x15e0   :  { %1077 = vst.msk [vmem:[%s1824_s5 + $0x10] sm:$0xf] %vm46_vm2, %v1075_v8 }
0x15e1   :  { %v1085_v9 = vpop.permute.xlu1 %1084 }
0x15e2   :  { %1435 = vmatmul.mubr.msk.bf16.vlgmr.msra.gmra.mrb[32].mxu0 %vm83_vm1, %v1085_v9 }
0x16b5   :  { %v1135_v11 = vpop.f32.mrb[32].mxu0 }
0x16b6   :  { %v1136_v14 = vadd.f32 %v1247_v13, %v1135_v11  ;;  %v1436_v15 = vpop.f32.mrb[33].mxu0 }
0x16b7   :  { %v1138_v17 = vpop.f32.mrb[34].mxu0 }
0x16b8   :  { %1141 = vst.msk [vmem:[%s1824_s5 + $0x18] sm:$0xf] %vm46_vm2, %v1136_v14  ;;  %1147 = vrot.lane.b32.xlu0 %v1136_v14, %s1499_s1  ;;  %1143 = vrot.lane.b32.xlu1 %v1136_v14, %s1501_s12  ;;  %v1437_v18 = vpop.f32.mrb[35].mxu0 }
0x16bc   :  { %1151 = vrot.lane.b32.xlu1 %v1136_v14, %s1500_s2 }
0x172a   :  { %v1148_v10 = vpop.permute.xlu0 %1147  ;;  %v1144_v19 = vpop.permute.xlu1 %1143 }
0x172b   :  { %1150 = vst.msk [vmem:[%s1824_s5 + $0x20] sm:$0xf] %vm46_vm2, %v1148_v10  ;;  %1146 = vst.msk [vmem:[%s1824_s5 + $0x1c] sm:$0xf] %vm46_vm2, %v1144_v19 }
0x172e   :  { %v1152_v21 = vpop.permute.xlu1 %1151 }
0x172f   :  { %1154 = vst.msk [vmem:[%s1824_s5 + $0x24] sm:$0xf] %vm46_vm2, %v1152_v21 }

</bundles_post_ra>
